<compile_context>
chip_gen: v7x
topology: tpu7x:2x2x1
jax: 0.10.0
libtpu: 0.0.40
codegen_flags: <defaults>
</compile_context>

<pallas_src>
import functools

import jax
import jax.numpy as jnp
from jax import lax
from jax.experimental import pallas as pl
from jax.experimental.pallas import tpu as pltpu


def _round_up(v, m):
    return ((v + m - 1) // m) * m


def _pick_block_b(B, bytes_per_batch, budget_bytes, max_block=8):
    """Largest divisor of B (<= max_block) that fits the VMEM budget and keeps
    the grid extent >= 2 when possible (so v7x's two TensorCores both get work)."""
    best = 1
    for d in range(1, min(B, max_block) + 1):
        if B % d:
            continue
        if d * bytes_per_batch > budget_bytes:
            continue
        if B >= 2 and B // d < 2:
            continue
        best = d
    return best


def _hypconv_kernel(x_ref, h_ref, w_ref, b_ref, out_ref, *, block_b):
    # x_ref:   [block_b, N, c1]
    # h_ref:   [block_b, N, E]
    # w_ref:   [c1, c2p]      (c2p = c2 padded to a multiple of 128)
    # b_ref:   [1,  c2p]
    # out_ref: [block_b, N, c2p]
    W = w_ref[...].astype(jnp.float32)          # [c1, c2p]
    bias = b_ref[...].astype(jnp.float32)       # [1, c2p]

    # block_b is small and static -> statically unrolled loop of 2-D matmuls.
    for bi in range(block_b):
        xb = x_ref[bi].astype(jnp.float32)      # [N, c1]
        Hb = h_ref[bi].astype(jnp.float32)      # [N, E]

        # --- degrees (no transpose of H anywhere) ---
        deg_e = jnp.sum(Hb, axis=0, keepdims=True)                 # [1, E] sublane reduce
        inv_e = jnp.where(deg_e != 0.0,
                          pl.reciprocal(deg_e, approx=False), 0.0)  # [1, E]
        m_e = (deg_e != 0.0).astype(jnp.float32)                    # [1, E] non-empty edge mask
        deg_v = jnp.sum(Hb, axis=1, keepdims=True)                  # [N, 1]
        inv_v = jnp.where(deg_v != 0.0,
                          pl.reciprocal(deg_v, approx=False), 0.0)  # [N, 1]

        # --- v2e: H^T @ x via dot_general contracting H's leading (node) axis ---
        e_sum = lax.dot_general(Hb, xb, (((0,), (0,)), ((), ())),
                                preferred_element_type=jnp.float32)  # [E, c1]

        # --- e2v: D_v^{-1} H (D_e^{-1} e_sum) == D_v^{-1} (H * inv_e) @ e_sum ---
        H_scaled = Hb * inv_e                                        # [N, E] (cols scaled)
        v_sum = jnp.dot(H_scaled, e_sum,
                        preferred_element_type=jnp.float32)          # [N, c1]
        agg = inv_v * v_sum                                          # [N, c1]

        # --- bias path: D_v^{-1} (H @ m_e), per-node scalar weight for the bias ---
        bias_scale = inv_v * jnp.sum(Hb * m_e, axis=1, keepdims=True)  # [N, 1]

        # --- project last (exact by linearity): out = agg @ W + bias_scale * b ---
        out = jnp.dot(agg, W, preferred_element_type=jnp.float32) + bias_scale * bias
        out_ref[bi] = out.astype(out_ref.dtype)


def hypconv(x, H, W, b, *, block_b=None):
    B, N, c1 = x.shape
    Bh, Nh, E = H.shape
    assert Bh == B and Nh == N, "x / H batch or node dims disagree"
    c2 = W.shape[1]

    # Lane-dense output: pad the output feature dim to a multiple of 128.
    c2p = _round_up(c2, 128)
    if c2p != c2:
        W = jnp.pad(W, ((0, 0), (0, c2p - c2)))
        b = jnp.pad(b, ((0, c2p - c2),))
    b2d = b.reshape(1, c2p)

    # VMEM-budget-aware batch blocking (inputs/outputs are double-buffered).
    bytes_per_batch = 2 * 4 * (N * c1 + N * E + N * c2p)
    if block_b is None:
        block_b = _pick_block_b(B, bytes_per_batch, budget_bytes=24 * 1024 * 1024)
    assert B % block_b == 0, "block_b must divide the batch size"
    grid = (B // block_b,)

    kernel = functools.partial(_hypconv_kernel, block_b=block_b)

    out = pl.pallas_call(
        kernel,
        out_shape=jax.ShapeDtypeStruct((B, N, c2p), x.dtype),
        grid=grid,
        in_specs=[
            pl.BlockSpec((block_b, N, c1), lambda i: (i, 0, 0)),
            pl.BlockSpec((block_b, N, E), lambda i: (i, 0, 0)),
            pl.BlockSpec((c1, c2p), lambda i: (0, 0)),
            pl.BlockSpec((1, c2p), lambda i: (0, 0)),
        ],
        out_specs=pl.BlockSpec((block_b, N, c2p), lambda i: (i, 0, 0)),
        compiler_params=pltpu.CompilerParams(
            dimension_semantics=("parallel",),
            vmem_limit_bytes=32 * 1024 * 1024,
        ),
    )(x, H, W, b2d)

    return out[..., :c2]


def hypconv_ref(x, H, W, b):
    # pure-JAX reference of the PyTorch forward (fc -> v2e mean -> e2v mean)
    xf = jnp.einsum("bnc,cd->bnd", x, W) + b
    Ht = jnp.swapaxes(H, 1, 2)                                   # [B, E, N]
    E_feat = jnp.einsum("ben,bnd->bed", Ht, xf)
    deg_e = jnp.sum(Ht, axis=2, keepdims=True)
    E_feat = jnp.where(deg_e == 0.0, 0.0, 1.0 / deg_e) * E_feat
    V = jnp.einsum("bne,bed->bnd", H, E_feat)
    deg_v = jnp.sum(H, axis=2, keepdims=True)
    return jnp.where(deg_v == 0.0, 0.0, 1.0 / deg_v) * V


if __name__ == "__main__":
    B, N, E, c1, c2 = 2, 16, 8, 4, 32

    key = jax.random.PRNGKey(0)
    kx, kh, kw, kb = jax.random.split(key, 4)

    x = jax.random.normal(kx, (B, N, c1), dtype=jnp.float32)
    # binary incidence matrix (some hyperedges/nodes may be empty -> exercises inf->0 path)
    H = (jax.random.uniform(kh, (B, N, E)) > 0.6).astype(jnp.float32)

    # deterministic Linear(c1, c2) params
    bound = 1.0 / (c1 ** 0.5)
    W = jax.random.uniform(kw, (c1, c2), minval=-bound, maxval=bound,
                           dtype=jnp.float32)
    b = jax.random.uniform(kb, (c2,), minval=-bound, maxval=bound,
                           dtype=jnp.float32)

    out = hypconv(x, H, W, b)
    out = jax.block_until_ready(out)

    ref = hypconv_ref(x, H, W, b)
    assert out.shape == (B, N, c2)
    assert jnp.allclose(out, ref, atol=1e-5, rtol=1e-5), "mismatch vs reference"

    print("KERNEL_OK")
</pallas_src>

<mosaic_0001>
module attributes {stable_mosaic.version = 11 : i64} {
  func.func @_hypconv_kernel(%arg0: i32, %arg1: memref<1x16x4xf32, #tpu.memory_space<vmem>>, %arg2: memref<1x16x8xf32, #tpu.memory_space<vmem>>, %arg3: memref<4x128xf32, #tpu.memory_space<vmem>>, %arg4: memref<1x128xf32, #tpu.memory_space<vmem>>, %arg5: memref<1x16x128xf32, #tpu.memory_space<vmem>>) attributes {dimension_semantics = [#tpu.dimension_semantics<parallel>], iteration_bounds = array<i64: 2>, scalar_prefetch = 0 : i64, scratch_operands = 0 : i64, tpu.core_type = #tpu.core_type<tc>, window_params = [{transform_indices = @transform_0, window_bounds = array<i64: 1, 16, 4>}, {transform_indices = @transform_1, window_bounds = array<i64: 1, 16, 8>}, {pipeline_mode = #tpu.pipeline_mode<synchronous>, transform_indices = @transform_2, window_bounds = array<i64: 4, 128>}, {pipeline_mode = #tpu.pipeline_mode<synchronous>, transform_indices = @transform_3, window_bounds = array<i64: 1, 128>}, {transform_indices = @transform_4, window_bounds = array<i64: 1, 16, 128>}]} {
    %c0 = arith.constant 0 : index
    %c0_0 = arith.constant 0 : index
    %0 = vector.load %arg3[%c0, %c0_0] : memref<4x128xf32, #tpu.memory_space<vmem>>, vector<4x128xf32>
    %c0_1 = arith.constant 0 : index
    %c0_2 = arith.constant 0 : index
    %1 = vector.load %arg4[%c0_1, %c0_2] : memref<1x128xf32, #tpu.memory_space<vmem>>, vector<1x128xf32>
    %c0_3 = arith.constant 0 : index
    %c0_4 = arith.constant 0 : index
    %c0_5 = arith.constant 0 : index
    %2 = vector.load %arg1[%c0_3, %c0_4, %c0_5] : memref<1x16x4xf32, #tpu.memory_space<vmem>>, vector<1x16x4xf32>
    %3 = vector.shape_cast %2 : vector<1x16x4xf32> to vector<16x4xf32>
    %c0_6 = arith.constant 0 : index
    %c0_7 = arith.constant 0 : index
    %c0_8 = arith.constant 0 : index
    %4 = vector.load %arg2[%c0_6, %c0_7, %c0_8] : memref<1x16x8xf32, #tpu.memory_space<vmem>>, vector<1x16x8xf32>
    %5 = vector.shape_cast %4 : vector<1x16x8xf32> to vector<16x8xf32>
    %cst = arith.constant dense<0.000000e+00> : vector<8xf32>
    %6 = vector.multi_reduction <add>, %5, %cst [0] : vector<16x8xf32> to vector<8xf32>
    %7 = vector.shape_cast %6 : vector<8xf32> to vector<1x8xf32>
    %cst_9 = arith.constant 0.000000e+00 : f32
    %8 = vector.broadcast %cst_9 : f32 to vector<1x8xf32>
    %9 = arith.cmpf one, %7, %8 : vector<1x8xf32>
    %10 = tpu.reciprocal %7 : vector<1x8xf32> -> vector<1x8xf32>
    %cst_10 = arith.constant 0.000000e+00 : f32
    %11 = vector.broadcast %cst_10 : f32 to vector<1x8xf32>
    %12 = arith.select %9, %10, %11 : vector<1x8xi1>, vector<1x8xf32>
    %cst_11 = arith.constant 0.000000e+00 : f32
    %13 = vector.broadcast %cst_11 : f32 to vector<1x8xf32>
    %14 = arith.cmpf one, %7, %13 : vector<1x8xf32>
    %15 = arith.extui %14 : vector<1x8xi1> to vector<1x8xi32>
    %16 = arith.sitofp %15 : vector<1x8xi32> to vector<1x8xf32>
    %cst_12 = arith.constant dense<0.000000e+00> : vector<16xf32>
    %17 = vector.multi_reduction <add>, %5, %cst_12 [1] : vector<16x8xf32> to vector<16xf32>
    %18 = vector.shape_cast %17 : vector<16xf32> to vector<16x1xf32>
    %cst_13 = arith.constant 0.000000e+00 : f32
    %19 = vector.broadcast %cst_13 : f32 to vector<16x1xf32>
    %20 = arith.cmpf one, %18, %19 : vector<16x1xf32>
    %21 = tpu.reciprocal %18 : vector<16x1xf32> -> vector<16x1xf32>
    %cst_14 = arith.constant 0.000000e+00 : f32
    %22 = vector.broadcast %cst_14 : f32 to vector<16x1xf32>
    %23 = arith.select %20, %21, %22 : vector<16x1xi1>, vector<16x1xf32>
    %cst_15 = arith.constant dense<0.000000e+00> : vector<8x4xf32>
    %24 = tpu.matmul %5, %3, %cst_15 {dimension_numbers = #tpu.dot_dimension_numbers<[0], [0], [1], [1], [0, 1, 1, 1], [], []>} : vector<16x8xf32>, vector<16x4xf32>, vector<8x4xf32> -> vector<8x4xf32>
    %25 = vector.broadcast %12 : vector<1x8xf32> to vector<16x8xf32>
    %26 = arith.mulf %5, %25 : vector<16x8xf32>
    %cst_16 = arith.constant dense<0.000000e+00> : vector<16x4xf32>
    %27 = tpu.matmul %26, %24, %cst_16 {dimension_numbers = #tpu.dot_dimension_numbers<[1], [0], [0], [1], [0, 0, 1, 1], [], []>} : vector<16x8xf32>, vector<8x4xf32>, vector<16x4xf32> -> vector<16x4xf32>
    %28 = vector.broadcast %23 : vector<16x1xf32> to vector<16x4xf32>
    %29 = arith.mulf %28, %27 : vector<16x4xf32>
    %30 = vector.broadcast %16 : vector<1x8xf32> to vector<16x8xf32>
    %31 = arith.mulf %5, %30 : vector<16x8xf32>
    %cst_17 = arith.constant dense<0.000000e+00> : vector<16xf32>
    %32 = vector.multi_reduction <add>, %31, %cst_17 [1] : vector<16x8xf32> to vector<16xf32>
    %33 = vector.shape_cast %32 : vector<16xf32> to vector<16x1xf32>
    %34 = arith.mulf %23, %33 : vector<16x1xf32>
    %cst_18 = arith.constant dense<0.000000e+00> : vector<16x128xf32>
    %35 = tpu.matmul %29, %0, %cst_18 {dimension_numbers = #tpu.dot_dimension_numbers<[1], [0], [0], [1], [0, 0, 1, 1], [], []>} : vector<16x4xf32>, vector<4x128xf32>, vector<16x128xf32> -> vector<16x128xf32>
    %36 = vector.broadcast %34 : vector<16x1xf32> to vector<16x128xf32>
    %37 = vector.broadcast %1 : vector<1x128xf32> to vector<16x128xf32>
    %38 = arith.mulf %36, %37 : vector<16x128xf32>
    %39 = arith.addf %35, %38 : vector<16x128xf32>
    %c0_19 = arith.constant 0 : index
    %c0_20 = arith.constant 0 : index
    %c0_21 = arith.constant 0 : index
    %40 = vector.load %arg5[%c0_19, %c0_20, %c0_21] : memref<1x16x128xf32, #tpu.memory_space<vmem>>, vector<1x16x128xf32>
    %41 = vector.shape_cast %40 : vector<1x16x128xf32> to vector<16x128xf32>
    %42 = vector.shape_cast %39 : vector<16x128xf32> to vector<1x16x128xf32>
    tpu.vector_store %arg5[%c0_19, %c0_20, %c0_21], %42 {strides = array<i32>} : memref<1x16x128xf32, #tpu.memory_space<vmem>>, vector<1x16x128xf32>,
    return
  }
  func.func @transform_0(%arg0: i32) -> (i32, i32, i32) {
    %c0_i32 = arith.constant 0 : i32
    %c0_i32_0 = arith.constant 0 : i32
    %c0_i32_1 = arith.constant 0 : i32
    return %arg0, %c0_i32, %c0_i32_0 : i32, i32, i32
  }
  func.func @transform_1(%arg0: i32) -> (i32, i32, i32) {
    %c0_i32 = arith.constant 0 : i32
    %c0_i32_0 = arith.constant 0 : i32
    %c0_i32_1 = arith.constant 0 : i32
    return %arg0, %c0_i32, %c0_i32_0 : i32, i32, i32
  }
  func.func @transform_2(%arg0: i32) -> (i32, i32) {
    %c0_i32 = arith.constant 0 : i32
    %c0_i32_0 = arith.constant 0 : i32
    %c0_i32_1 = arith.constant 0 : i32
    return %c0_i32, %c0_i32_0 : i32, i32
  }
  func.func @transform_3(%arg0: i32) -> (i32, i32) {
    %c0_i32 = arith.constant 0 : i32
    %c0_i32_0 = arith.constant 0 : i32
    %c0_i32_1 = arith.constant 0 : i32
    return %c0_i32, %c0_i32_0 : i32, i32
  }
  func.func @transform_4(%arg0: i32) -> (i32, i32, i32) {
    %c0_i32 = arith.constant 0 : i32
    %c0_i32_0 = arith.constant 0 : i32
    %c0_i32_1 = arith.constant 0 : i32
    return %arg0, %c0_i32, %c0_i32_0 : i32, i32, i32
  }
}

</mosaic_0001>

<bundles_post_ra>
// kernel: tpu_custom_call.1
= control target key start
LH: loop header
LB: loop body
LE: loop exit
PB: predicated region body
PF: predicated region fallthrough
CT: control target
= control target key end

     0   :  { %9 = vsyncpa [#allocation3], 0  ;;  %s949_s0 = inlined_call_operand.vmem [shape: f32[2,16,4], index: 0, kind: input, shape index: {}]   ;;  %s950_s1 = inlined_call_operand.vmem [shape: f32[2,16,8], index: 1, kind: input, shape index: {}]   ;;  %s951_s2 = inlined_call_operand.vmem [shape: f32[4,128], index: 2, kind: input, shape index: {}]   ;;  %s952_s3 = inlined_call_operand.vmem [shape: f32[1,128], index: 3, kind: input, shape index: {}]   ;;  %s953_s4 = inlined_call_operand.hbm [shape: f32[2,16,128], index: 4, kind: output, shape index: {}]  }
   0x1   :  { %11 = vsyncpa [#allocation3 + $0x1], 0  ;;  %s831_s15 = smov 0   ;;  %s833_s16 = smov 0  }
   0x2   :  { %s835_s17 = smov 0   ;;  %s837_s18 = smov 0  }
   0x3 LB: > { %s852_s19 = sadd.s32 4294967295, %s798_s18   ;;  %s632_s20 = sadd.s32 4294967294, %s798_s18   ;;  %s798_s18 = sphi %s837_s18, %s959_s18   ;;  %s794_s17 = sphi %s835_s17, %s958_s17   ;;  %s790_s16 = sphi %s833_s16, %s957_s16   ;;  %s786_s15 = sphi %s831_s15, %s956_s15  }
   0x4   : > { %s856_s21 = sadd.s32 1, %s798_s18   ;;  %s118_s22 = sadd.s32 1, %s794_s17 }
   0x5   : > { %s115_s23 = ssub.s32 %s798_s18, %s856_s21  ;;  %p128_p0 = scmp.ne.s32.totalorder %s794_s17, %s790_s16 }
   0x6   : > { %p116_p1 = scmp.eq.s32.totalorder %s115_s23, 0  ;;  %p129_p2 = scmp.eq.s32.totalorder %s852_s19, 1 }
   0x7   : > { %p134_p3 = scmp.ne.s32.totalorder %s790_s16, %s786_s15  ;;  %p135_p4 = scmp.eq.s32.totalorder %s632_s20, 1 }
   0x8   : > { %s867_s24 = scalar_select %p116_p1, %s794_s17, %s118_s22  }
   0x9   : > { %p869_p5 = por %p129_p2, %p128_p0  ;;  %p873_p6 = por %p135_p4, %p134_p3 }
   0xa   : > { %p635_p7 = scmp.ge.s32.totalorder %s798_s18, 1  ;;  %p175_p8 = scmp.lt.s32.totalorder %s798_s18, 3 }
   0xc   : > { %p176_p9 = pnand %p635_p7, %p175_p8 }
   0xd   : > { %p206_p10 = scmp.lt.s32.totalorder (!%p176_p9), %s852_s19, 1  ;;  %v800_v0 = vmov (!%p176_p9), 0.0|0.0   ;;  %vm801_vm0 = vmmov (!%p176_p9), 0   ;;  %v802_v1 = vmov (!%p176_p9), 0.0   ;;  %vm222_vm1 = vcmask (!%p176_p9), 64512   ;;  %s203_s11 = sand.u32 (!%p176_p9), 1, %s790_s16  }
   0xe   : > { %179 = sbr.rel (%p176_p9) target bundleno = 815 (0x32f), region = 36  ;;  %683 = vmatprep.subr.bf16.mxu0 (!%p176_p9), %v800_v0  ;;  %670 = vmatprep.mubr.msk.f32.mxu0 (!%p176_p9), %vm801_vm0, %v802_v1  ;;  %vm279_vm3 = vcmask (!%p176_p9), 130048   ;;  %v216_v28 = vld [vmem:[%s951_s2] sm:$0xf] (!%p176_p9)  ;;  %vm463_vm4 = vcmask (!%p176_p9), 1043456   ;;  %vm456_vm7 = vcmask (!%p176_p9), 31744  }
   0xf   : > { %s636_s12 = sshll.u32 (!%p176_p9), %s203_s11, 4  ;;  %v645_v43 = vld [vmem:[%s952_s3] ss:$0 sm:$0xff] (!%p176_p9)  ;;  %s656_s23 = sshll.u32 (!%p176_p9), %s852_s19, 8 }
  0x10   : > { %s205_s20 = scalar_lea.vmem (!%p176_p9), [#allocation2], %s636_s12  ;;  %s906_s29 = scalar_lea.hbm (!%p176_p9), %s953_s4, %s656_s23 }
  0x11   : > { %s558_s22 = sshll.u32 (!%p176_p9), %s205_s20, 4  ;;  %s908_s30 = scalar_lea.sflag (!%p176_p9), [#allocation3], %s203_s11  ;;  %s901_s22 = int_to_ptr.vmem [resolvable:$true] %s558_s22 }
  0x15   : > { %s207_s27 = scalar_select %p206_p10, %s852_s19, 1 }
  0x16   : > { %s736_s19 = scalar_lea.vmem %s901_s22, 256 }
  0x17   : > { %s654_s28 = sshll.u32 %s207_s27, 4  ;;  %p737_p11 = scmp.ne.s32.totalorder %s901_s22, %s736_s19 }
  0x18   : > { %s215_s5 = scalar_lea.vmem %s950_s1, %s654_s28  ;;  %s210_s8 = scalar_lea.vmem %s949_s0, %s654_s28 }
  0x19   : > { %v220_v2 = vld [vmem:[%s215_s5] sm:$0xff]  ;;  %v221_v3 = vld [vmem:[%s215_s5 + $0x8] sm:$0xff]  ;;  %p738_p12 = pnand %p737_p11, %p869_p5  ;;  %s803_s5 = smov [#allocation2]  }
  0x1a   : > { %v218_v4 = vld [vmem:[%s210_s8] sm:$0xff]  ;;  %247 = vxpose.xlu0.b32.start [1/2] (short) (narrow) %v220_v2, 8  ;;  %v223_v5 = vsel %vm222_vm1, %v220_v2, 0.0  ;;  %v224_v6 = vsel %vm222_vm1, %v221_v3, 0.0  ;;  %v219_v7 = vld [vmem:[%s210_s8 + $0x8] sm:$0xff]  ;;  %s740_s6 = sshll.u32 %s803_s5, 4  ;;  %s741_s6 = int_to_ptr.vmem [resolvable:$false] %s740_s6 }
  0x1b   : > { %v225_v8 = vadd.f32 %v224_v6, %v223_v5  ;;  %v684_v9 = vpack.c.bf16 %v219_v7, %v218_v4  ;;  %237 = vadd.xlane.f32.xlu1 %v223_v5  ;;  %p739_p13 = pneg %p738_p12  ;;  %s742_s7 = scalar_lea.vmem %s741_s6, 512 }
  0x1c   : > { %p743_p0 = scmp.lt.s32.totalorder %s901_s22, %s741_s6  ;;  %p744_p1 = scmp.lt.s32.totalorder %s742_s7, %s736_s19 }
  0x1d   : > { %685 = vmatpush3.bf16.msra.mxu0 %v684_v9  ;;  %v226_v10 = vrot.slane %v225_v8, 4 }
  0x1e   : > { %248 = vxpose.xlu0.b32.end [2/2] (short) (narrow) %v221_v3, 8  ;;  %p745_p2 = por %p744_p1, %p743_p0 }
  0x1f   : > { %v227_v11 = vadd.f32 %v226_v10, %v225_v8  ;;  %239 = vadd.xlane.f32.xlu1 %v224_v6 }
  0x20   : > { %p746_p3 = pnand %p745_p2, %p739_p13 }
  0x21   : > { %v228_v12 = vrot.slane %v227_v11, 2 }
  0x23   : > { %v229_v13 = vadd.f32 %v228_v12, %v227_v11 }
  0x25   : > { %v230_v14 = vrot.slane %v229_v13, 1 }
  0x27   : > { %v231_v15 = vadd.f32 %v230_v14, %v229_v13 }
  0x29   : > { %vm232_vm2 = vcmp.ne.f32.partialorder %v231_v15, 0.0  ;;  %730 = vrcp.f32 %v231_v15 }
  0x2a   : > { %v641_v16 = vsel %vm232_vm2, 1.0, %v802_v1 }
  0x2b   : > { %v438_v21 = vmul.f32 %v641_v16, %v220_v2  ;;  %v439_v22 = vmul.f32 %v641_v16, %v221_v3 }
  0x2d   : > { %v440_v23 = vsel %vm222_vm1, %v438_v21, 0.0  ;;  %v443_v24 = vsel %vm222_vm1, %v439_v22, 0.0 }
  0x2e   : > { %444 = vadd.xlane.f32.xlu1 %v443_v24 }
  0x33   : > { %v731_v18 = vpop.eup %730 }
  0x34   : > { %v234_v19 = vsel %vm232_vm2, %v731_v18, 0.0 }
  0x35   : > { %v353_v20 = vmul.f32 %v234_v19, %v220_v2  ;;  %v354_v25 = vmul.f32 %v234_v19, %v221_v3 }
  0x37   : > { %675 = vmatprep.mubr.msk.f32.mxu1 %vm222_vm1, %v353_v20 }
  0x4b   : > { %441 = vadd.xlane.f32.xlu0 %v440_v23 }
  0x9a   : > { %v263_v17 = vpop.trf.xlu0 }
  0x9b   : > { %671 = vmatmul.mubr.msk.f32.vlgmr.msra.gmra.mrb[0].mxu0 %vm279_vm3, %v263_v17 }
  0xa8   : > { %v238_v29 = vpop.xlane.xlu1 %237 }
  0xa9   : > { %732 = vrcp.f32 %v238_v29  ;;  %vm241_vm5 = vcmp.ne.f32.partialorder %v238_v29, 0.0 }
  0xac   : > { %v240_v30 = vpop.xlane.xlu1 %239 }
  0xad   : > { %734 = vrcp.f32 %v240_v30  ;;  %vm242_vm6 = vcmp.ne.f32.partialorder %v240_v30, 0.0 }
  0xb3   : > { %v733_v31 = vpop.eup %732 }
  0xb4   : > { %v245_v34 = vsel %vm241_vm5, %v733_v31, 0.0 }
  0xb7   : > { %v735_v32 = vpop.eup %734 }
  0xb8   : > { %v246_v36 = vsel %vm242_vm6, %v735_v32, 0.0 }
  0xbb   : > { %v445_v39 = vpop.xlane.xlu1 %444 }
  0xbc   : > { %v447_v41 = vmul.f32 %v445_v39, %v246_v36 }
  0xbe   : > { %v455_v44 = vmul.f32 %v645_v43, %v447_v41 }
  0xd8   : > { %v442_v40 = vpop.xlane.xlu0 %441 }
  0xd9   : > { %v446_v42 = vmul.f32 %v442_v40, %v245_v34 }
  0xdb   : > { %v454_v46 = vmul.f32 %v645_v43, %v446_v42 }
 0x16e   : > { %v349_v26 = vpop.f32.mrb[0].mxu0 }
 0x16f   : > { %v672_v27 = vpop.f32.mrb[1].mxu0  ;;  %673 = vmatprep.subr.mxu1 %v349_v26 }
 0x170   : > { %674 = vmatpush3.msra.mxu1 %v349_v26 }
 0x171   : > { %676 = vmatmul.mubr.msk.f32.vlgmr.msra.gmra.mrb[0].mxu1 %vm222_vm1, %v354_v25  ;;  %678 = vmatprep.subr.msk.mxu1 %vm463_vm4, %v216_v28 }
 0x172   : > { %679 = vmatpush3.msk.msra.mxu1 %vm463_vm4, %v216_v28 }
 0x244   : > { %v677_v33 = vpop.f32.mrb[0].mxu1 }
 0x245   : > { %v427_v35 = vpop.f32.mrb[1].mxu1  ;;  %v437_v38 = vmul.f32 %v677_v33, %v246_v36 }
 0x246   : > { %v436_v37 = vmul.f32 %v427_v35, %v245_v34 }
 0x248   : > { %680 = vmatprep.mubr.msk.f32.mxu1 %vm456_vm7, %v436_v37 }
 0x249   : > { %681 = vmatmul.mubr.msk.f32.vlgmr.msra.gmra.mrb[2].mxu1 %vm456_vm7, %v437_v38 }
 0x31c   : > { %v682_v45 = vpop.f32.mrb[2].mxu1 }
 0x31d   : > { %v539_v47 = vadd.f32 %v682_v45, %v455_v44  ;;  %v533_v48 = vpop.f32.mrb[3].mxu1 }
 0x31e   : > { %v534_v49 = vadd.f32 %v533_v48, %v454_v46 }
 0x31f   : > { %543 = vst [vmem:[%s205_s20 + $0x8] sm:$0xff] %v539_v47 }
 0x320   : > { %542 = vst [vmem:[%s205_s20] sm:$0xff] %v534_v49 }
 0x321   : > { %749 = shalt.err (!%p746_p3)
}
 0x322   : > { %s750_s8 = scalar_lea.hbm %s906_s29, 256  ;;  %s754_s11 = scalar_lea.hbm %s953_s4, 512 }
 0x323   : > { %p751_p4 = scmp.ne.s32.totalorder %s906_s29, %s750_s8  ;;  %p755_p9 = scmp.lt.u32.totalorder %s906_s29, %s953_s4 }
 0x324   : > { %p756_p10 = scmp.lt.u32.totalorder %s754_s11, %s750_s8  ;;  %p758_p12 = scmp.lt.u32.totalorder %s750_s8, %s906_s29 }
 0x325   : > { %p752_p7 = pnand %p751_p4, %p869_p5 }
 0x326   : > { %p757_p11 = por %p756_p10, %p755_p9 }
 0x327   : > { %p753_p8 = pneg %p752_p7 }
 0x328   : > { %p759_p13 = por %p758_p12, %p757_p11 }
 0x32a   : > { %p760_p0 = pnand %p759_p13, %p753_p8 }
 0x32c   : > { %763 = shalt.err (!%p760_p0)
}
 0x32d   : > { %s804_s14 = smov 128   ;;  %s805_s20 = smov 8  }
 0x32e   : > { %686 = dma.vmem_to_hbm [thread:$0]  (%p869_p5), %s901_s22, 256, %s906_s29, %s908_s30, %s804_s14, %s804_s14, %s805_s20  }
 0x32f PF: > { %p692_p1 = scmp.ge.s32.totalorder %s798_s18, 2  ;;  %s573_s23 = sand.u32 1, %s786_s15  }
 0x330   : > { %s574_s27 = scalar_lea.sflag [#allocation3], %s573_s23 }
 0x331   : > { %p689_p2 = pnand %p692_p1, %p873_p6 }
 0x333   : > { %781 = dma.done.wait (!%p689_p2), %s574_s27, 256  }
 0x334   : > { %783 = vsyncadd (!%p689_p2), %s574_s27, 4294967040  ;;  %p14_p3 = scmp.ge.s32.totalorder %s856_s21, 4   ;;  %s956_s15 = smov %s790_s16 }
 0x335   : > { %s957_s16 = smov %s794_s17  ;;  %s958_s17 = smov %s867_s24 }
 0x336   : > { %s959_s18 = smov %s856_s21  ;;  %16 = sbr.rel (!%p14_p3) target bundleno = 3 (0x3), region = 74 }
 0x33d   :  { %579 = vsyncpa [#allocation3], 1 }
 0x33e   :  { %581 = vsyncpa [#allocation3 + $0x1], 1 }

</bundles_post_ra>
